<compile_context>
chip_gen: v5e
topology: v5e:2x2
jax: 0.10.0
libtpu: 0.0.40
codegen_flags: <defaults>
</compile_context>

<pallas_src>
import jax
import jax.numpy as jnp
from jax.experimental import pallas as pl
from jax.experimental.pallas import tpu as pltpu


def _round_up(n, m):
    return ((n + m - 1) // m) * m


def _make_kernel(out_widths):
    """Build the fused 6-layer MLP kernel.

    out_widths: static per-layer (padded) output widths = columns of W1..W6.
    """

    def kernel(x_ref, w1, w2, w3, w4, w5, w6, b_ref, out_ref):
        w_refs = (w1, w2, w3, w4, w5, w6)
        h = x_ref[...].astype(jnp.float32)
        for li, (w_ref, width) in enumerate(zip(w_refs, out_widths)):
            # y = h @ W + b   (Dropout is identity in eval mode)
            h = jnp.dot(h, w_ref[...], preferred_element_type=jnp.float32)
            h = h + b_ref[li:li + 1, :width]
            if li not in (2, 5):        # no ReLU after encoder[-1]/decoder[-1]
                h = jnp.maximum(h, 0.0)
        out_ref[...] = h.astype(out_ref.dtype)

    return kernel


def init_params(key, dim_obs, dim_embed, dtype=jnp.float32):
    """PyTorch nn.Linear-style init: uniform(-1/sqrt(fan_in), +1/sqrt(fan_in))."""
    h1 = dim_embed // 2 ** 5
    h2 = dim_embed // 2 ** 2
    layer_dims = [
        (dim_obs, h1), (h1, h2), (h2, dim_embed),        # encoder
        (dim_embed, h2), (h2, h1), (h1, dim_obs),        # decoder
    ]
    params = []
    for fan_in, fan_out in layer_dims:
        key, kw, kb = jax.random.split(key, 3)
        bound = 1.0 / (fan_in ** 0.5)
        w = jax.random.uniform(kw, (fan_in, fan_out), dtype, -bound, bound)
        b = jax.random.uniform(kb, (fan_out,), dtype, -bound, bound)
        params.append((w, b))
    return params


def prepare_packed_params(params, dim_obs, dim_embed):
    """Zero-pad tiny feature dims to 128 lanes and pack biases into one buffer.

    Padding is mathematically exact: padded W columns + zero bias give zero
    activations (ReLU(0)=0), and padded W rows of the next layer are zero.
    """
    h1 = max(dim_embed // 2 ** 5, 1)
    h2 = max(dim_embed // 2 ** 2, 1)
    p1 = _round_up(h1, 128)
    p2 = _round_up(h2, 128)
    pe = _round_up(dim_embed, 128)

    in_dims = [dim_obs, p1, p2, pe, p2, p1]
    out_dims = [p1, p2, pe, p2, p1, dim_obs]
    bias_lanes = _round_up(max(out_dims), 128)

    ws, bias_rows = [], []
    for (w, b), di, do in zip(params, in_dims, out_dims):
        fi, fo = w.shape
        wp = jnp.zeros((di, do), jnp.float32).at[:fi, :fo].set(
            w.astype(jnp.float32))
        br = jnp.zeros((bias_lanes,), jnp.float32).at[:fo].set(
            b.astype(jnp.float32))
        ws.append(wp)
        bias_rows.append(br)

    # One sublane-aligned bias buffer: rows 0..5 are the six layer biases.
    bpack = jnp.zeros((8, bias_lanes), jnp.float32).at[:6, :].set(
        jnp.stack(bias_rows))
    return ws, bpack, tuple(out_dims)


def autoencoder_forward(x, params, dim_obs, dim_embed, tb_target=512):
    batch = x.shape[0]
    ws, bpack, out_widths = prepare_packed_params(params, dim_obs, dim_embed)

    # Batch tile: big enough to amortize per-step overhead, tiny VMEM footprint
    # (weights are resident; x/out tiles are TB x dim_obs f32, double-buffered).
    tb = min(tb_target, _round_up(batch, 8))
    batch_padded = _round_up(batch, tb)
    xp = x if batch_padded == batch else jnp.pad(
        x, ((0, batch_padded - batch), (0, 0)))
    grid = (batch_padded // tb,)

    kernel = _make_kernel(out_widths)

    def const_spec(shape):
        # Constant block index => buffer stays resident across grid steps.
        return pl.BlockSpec(shape, lambda i: (0,) * len(shape))

    in_specs = [pl.BlockSpec((tb, dim_obs), lambda i: (i, 0))]
    in_specs += [const_spec(w.shape) for w in ws]
    in_specs += [const_spec(bpack.shape)]
    out_spec = pl.BlockSpec((tb, dim_obs), lambda i: (i, 0))

    # Advisory cost hint using the real (unpadded) math.
    flops = 2 * batch * sum(w.shape[0] * w.shape[1] for (w, _) in params)
    bytes_accessed = 4 * (2 * batch * dim_obs
                          + sum(w.size + b.size for (w, b) in params))

    out = pl.pallas_call(
        kernel,
        out_shape=jax.ShapeDtypeStruct((batch_padded, dim_obs), x.dtype),
        grid=grid,
        in_specs=in_specs,
        out_specs=out_spec,
        compiler_params=pltpu.CompilerParams(
            dimension_semantics=("parallel",)),
        cost_estimate=pl.CostEstimate(
            flops=flops, transcendentals=0, bytes_accessed=bytes_accessed),
    )(xp, *ws, bpack)

    return out if batch_padded == batch else out[:batch]


def autoencoder_ref(x, params):
    h = x.astype(jnp.float32)
    for i, (w, b) in enumerate(params):
        h = h @ w + b
        if i not in (2, 5):
            h = jnp.maximum(h, 0.0)
    return h.astype(x.dtype)


if __name__ == "__main__":
    batch = 8
    dim_obs = 64
    dim_embed = 128   # hidden sizes: 128 // 32 = 4, 128 // 4 = 32

    key = jax.random.PRNGKey(0)
    key, kx = jax.random.split(key)
    x = jax.random.normal(kx, (batch, dim_obs), dtype=jnp.float32)
    params = init_params(key, dim_obs, dim_embed)

    out = autoencoder_forward(x, params, dim_obs, dim_embed)
    out = jax.block_until_ready(out)

    ref = autoencoder_ref(x, params)
    assert out.shape == (batch, dim_obs)
    assert jnp.allclose(out, ref, atol=1e-5, rtol=1e-5)

    print("KERNEL_OK")
</pallas_src>

<mosaic_0001>
module attributes {stable_mosaic.version = 11 : i64} {
  func.func @kernel(%arg0: i32, %arg1: memref<8x64xf32, #tpu.memory_space<vmem>>, %arg2: memref<64x128xf32, #tpu.memory_space<vmem>>, %arg3: memref<128x128xf32, #tpu.memory_space<vmem>>, %arg4: memref<128x128xf32, #tpu.memory_space<vmem>>, %arg5: memref<128x128xf32, #tpu.memory_space<vmem>>, %arg6: memref<128x128xf32, #tpu.memory_space<vmem>>, %arg7: memref<128x64xf32, #tpu.memory_space<vmem>>, %arg8: memref<8x128xf32, #tpu.memory_space<vmem>>, %arg9: memref<8x64xf32, #tpu.memory_space<vmem>>) attributes {dimension_semantics = [#tpu.dimension_semantics<parallel>], iteration_bounds = array<i64: 1>, scalar_prefetch = 0 : i64, scratch_operands = 0 : i64, tpu.core_type = #tpu.core_type<tc>, window_params = [{transform_indices = @transform_0, window_bounds = array<i64: 8, 64>}, {pipeline_mode = #tpu.pipeline_mode<synchronous>, transform_indices = @transform_1, window_bounds = array<i64: 64, 128>}, {pipeline_mode = #tpu.pipeline_mode<synchronous>, transform_indices = @transform_2, window_bounds = array<i64: 128, 128>}, {pipeline_mode = #tpu.pipeline_mode<synchronous>, transform_indices = @transform_3, window_bounds = array<i64: 128, 128>}, {pipeline_mode = #tpu.pipeline_mode<synchronous>, transform_indices = @transform_4, window_bounds = array<i64: 128, 128>}, {pipeline_mode = #tpu.pipeline_mode<synchronous>, transform_indices = @transform_5, window_bounds = array<i64: 128, 128>}, {pipeline_mode = #tpu.pipeline_mode<synchronous>, transform_indices = @transform_6, window_bounds = array<i64: 128, 64>}, {pipeline_mode = #tpu.pipeline_mode<synchronous>, transform_indices = @transform_7, window_bounds = array<i64: 8, 128>}, {transform_indices = @transform_8, window_bounds = array<i64: 8, 64>}]} {
    %c0 = arith.constant 0 : index
    %c0_0 = arith.constant 0 : index
    %0 = vector.load %arg1[%c0, %c0_0] : memref<8x64xf32, #tpu.memory_space<vmem>>, vector<8x64xf32>
    %c0_1 = arith.constant 0 : index
    %c0_2 = arith.constant 0 : index
    %1 = vector.load %arg2[%c0_1, %c0_2] : memref<64x128xf32, #tpu.memory_space<vmem>>, vector<64x128xf32>
    %cst = arith.constant dense<0.000000e+00> : vector<8x128xf32>
    %2 = tpu.matmul %0, %1, %cst {dimension_numbers = #tpu.dot_dimension_numbers<[1], [0], [0], [1], [0, 0, 1, 1], [], []>} : vector<8x64xf32>, vector<64x128xf32>, vector<8x128xf32> -> vector<8x128xf32>
    %c0_3 = arith.constant 0 : index
    %c0_4 = arith.constant 0 : index
    %3 = vector.load %arg8[%c0_3, %c0_4] : memref<8x128xf32, #tpu.memory_space<vmem>>, vector<1x128xf32>
    %4 = vector.broadcast %3 : vector<1x128xf32> to vector<8x128xf32>
    %5 = arith.addf %2, %4 : vector<8x128xf32>
    %cst_5 = arith.constant 0.000000e+00 : f32
    %6 = vector.broadcast %cst_5 : f32 to vector<8x128xf32>
    %7 = arith.maximumf %5, %6 : vector<8x128xf32>
    %c0_6 = arith.constant 0 : index
    %c0_7 = arith.constant 0 : index
    %8 = vector.load %arg3[%c0_6, %c0_7] : memref<128x128xf32, #tpu.memory_space<vmem>>, vector<128x128xf32>
    %cst_8 = arith.constant dense<0.000000e+00> : vector<8x128xf32>
    %9 = tpu.matmul %7, %8, %cst_8 {dimension_numbers = #tpu.dot_dimension_numbers<[1], [0], [0], [1], [0, 0, 1, 1], [], []>} : vector<8x128xf32>, vector<128x128xf32>, vector<8x128xf32> -> vector<8x128xf32>
    %c1 = arith.constant 1 : index
    %c0_9 = arith.constant 0 : index
    %10 = vector.load %arg8[%c1, %c0_9] : memref<8x128xf32, #tpu.memory_space<vmem>>, vector<1x128xf32>
    %11 = vector.broadcast %10 : vector<1x128xf32> to vector<8x128xf32>
    %12 = arith.addf %9, %11 : vector<8x128xf32>
    %cst_10 = arith.constant 0.000000e+00 : f32
    %13 = vector.broadcast %cst_10 : f32 to vector<8x128xf32>
    %14 = arith.maximumf %12, %13 : vector<8x128xf32>
    %c0_11 = arith.constant 0 : index
    %c0_12 = arith.constant 0 : index
    %15 = vector.load %arg4[%c0_11, %c0_12] : memref<128x128xf32, #tpu.memory_space<vmem>>, vector<128x128xf32>
    %cst_13 = arith.constant dense<0.000000e+00> : vector<8x128xf32>
    %16 = tpu.matmul %14, %15, %cst_13 {dimension_numbers = #tpu.dot_dimension_numbers<[1], [0], [0], [1], [0, 0, 1, 1], [], []>} : vector<8x128xf32>, vector<128x128xf32>, vector<8x128xf32> -> vector<8x128xf32>
    %c2 = arith.constant 2 : index
    %c0_14 = arith.constant 0 : index
    %17 = vector.load %arg8[%c2, %c0_14] : memref<8x128xf32, #tpu.memory_space<vmem>>, vector<1x128xf32>
    %18 = vector.broadcast %17 : vector<1x128xf32> to vector<8x128xf32>
    %19 = arith.addf %16, %18 : vector<8x128xf32>
    %c0_15 = arith.constant 0 : index
    %c0_16 = arith.constant 0 : index
    %20 = vector.load %arg5[%c0_15, %c0_16] : memref<128x128xf32, #tpu.memory_space<vmem>>, vector<128x128xf32>
    %cst_17 = arith.constant dense<0.000000e+00> : vector<8x128xf32>
    %21 = tpu.matmul %19, %20, %cst_17 {dimension_numbers = #tpu.dot_dimension_numbers<[1], [0], [0], [1], [0, 0, 1, 1], [], []>} : vector<8x128xf32>, vector<128x128xf32>, vector<8x128xf32> -> vector<8x128xf32>
    %c3 = arith.constant 3 : index
    %c0_18 = arith.constant 0 : index
    %22 = vector.load %arg8[%c3, %c0_18] : memref<8x128xf32, #tpu.memory_space<vmem>>, vector<1x128xf32>
    %23 = vector.broadcast %22 : vector<1x128xf32> to vector<8x128xf32>
    %24 = arith.addf %21, %23 : vector<8x128xf32>
    %cst_19 = arith.constant 0.000000e+00 : f32
    %25 = vector.broadcast %cst_19 : f32 to vector<8x128xf32>
    %26 = arith.maximumf %24, %25 : vector<8x128xf32>
    %c0_20 = arith.constant 0 : index
    %c0_21 = arith.constant 0 : index
    %27 = vector.load %arg6[%c0_20, %c0_21] : memref<128x128xf32, #tpu.memory_space<vmem>>, vector<128x128xf32>
    %cst_22 = arith.constant dense<0.000000e+00> : vector<8x128xf32>
    %28 = tpu.matmul %26, %27, %cst_22 {dimension_numbers = #tpu.dot_dimension_numbers<[1], [0], [0], [1], [0, 0, 1, 1], [], []>} : vector<8x128xf32>, vector<128x128xf32>, vector<8x128xf32> -> vector<8x128xf32>
    %c4 = arith.constant 4 : index
    %c0_23 = arith.constant 0 : index
    %29 = vector.load %arg8[%c4, %c0_23] : memref<8x128xf32, #tpu.memory_space<vmem>>, vector<1x128xf32>
    %30 = vector.broadcast %29 : vector<1x128xf32> to vector<8x128xf32>
    %31 = arith.addf %28, %30 : vector<8x128xf32>
    %cst_24 = arith.constant 0.000000e+00 : f32
    %32 = vector.broadcast %cst_24 : f32 to vector<8x128xf32>
    %33 = arith.maximumf %31, %32 : vector<8x128xf32>
    %c0_25 = arith.constant 0 : index
    %c0_26 = arith.constant 0 : index
    %34 = vector.load %arg7[%c0_25, %c0_26] : memref<128x64xf32, #tpu.memory_space<vmem>>, vector<128x64xf32>
    %cst_27 = arith.constant dense<0.000000e+00> : vector<8x64xf32>
    %35 = tpu.matmul %33, %34, %cst_27 {dimension_numbers = #tpu.dot_dimension_numbers<[1], [0], [0], [1], [0, 0, 1, 1], [], []>} : vector<8x128xf32>, vector<128x64xf32>, vector<8x64xf32> -> vector<8x64xf32>
    %c5 = arith.constant 5 : index
    %c0_28 = arith.constant 0 : index
    %36 = vector.load %arg8[%c5, %c0_28] : memref<8x128xf32, #tpu.memory_space<vmem>>, vector<1x64xf32>
    %37 = vector.broadcast %36 : vector<1x64xf32> to vector<8x64xf32>
    %38 = arith.addf %35, %37 : vector<8x64xf32>
    %c0_29 = arith.constant 0 : index
    %c0_30 = arith.constant 0 : index
    %39 = vector.load %arg9[%c0_29, %c0_30] : memref<8x64xf32, #tpu.memory_space<vmem>>, vector<8x64xf32>
    tpu.vector_store %arg9[%c0_29, %c0_30], %38 {strides = array<i32>} : memref<8x64xf32, #tpu.memory_space<vmem>>, vector<8x64xf32>,
    return
  }
  func.func @transform_0(%arg0: i32) -> (i32, i32) {
    %c0_i32 = arith.constant 0 : i32
    %c0_i32_0 = arith.constant 0 : i32
    return %arg0, %c0_i32 : i32, i32
  }
  func.func @transform_1(%arg0: i32) -> (i32, i32) {
    %c0_i32 = arith.constant 0 : i32
    %c0_i32_0 = arith.constant 0 : i32
    %c0_i32_1 = arith.constant 0 : i32
    return %c0_i32, %c0_i32_0 : i32, i32
  }
  func.func @transform_2(%arg0: i32) -> (i32, i32) {
    %c0_i32 = arith.constant 0 : i32
    %c0_i32_0 = arith.constant 0 : i32
    %c0_i32_1 = arith.constant 0 : i32
    return %c0_i32, %c0_i32_0 : i32, i32
  }
  func.func @transform_3(%arg0: i32) -> (i32, i32) {
    %c0_i32 = arith.constant 0 : i32
    %c0_i32_0 = arith.constant 0 : i32
    %c0_i32_1 = arith.constant 0 : i32
    return %c0_i32, %c0_i32_0 : i32, i32
  }
  func.func @transform_4(%arg0: i32) -> (i32, i32) {
    %c0_i32 = arith.constant 0 : i32
    %c0_i32_0 = arith.constant 0 : i32
    %c0_i32_1 = arith.constant 0 : i32
    return %c0_i32, %c0_i32_0 : i32, i32
  }
  func.func @transform_5(%arg0: i32) -> (i32, i32) {
    %c0_i32 = arith.constant 0 : i32
    %c0_i32_0 = arith.constant 0 : i32
    %c0_i32_1 = arith.constant 0 : i32
    return %c0_i32, %c0_i32_0 : i32, i32
  }
  func.func @transform_6(%arg0: i32) -> (i32, i32) {
    %c0_i32 = arith.constant 0 : i32
    %c0_i32_0 = arith.constant 0 : i32
    %c0_i32_1 = arith.constant 0 : i32
    return %c0_i32, %c0_i32_0 : i32, i32
  }
  func.func @transform_7(%arg0: i32) -> (i32, i32) {
    %c0_i32 = arith.constant 0 : i32
    %c0_i32_0 = arith.constant 0 : i32
    %c0_i32_1 = arith.constant 0 : i32
    return %c0_i32, %c0_i32_0 : i32, i32
  }
  func.func @transform_8(%arg0: i32) -> (i32, i32) {
    %c0_i32 = arith.constant 0 : i32
    %c0_i32_0 = arith.constant 0 : i32
    return %arg0, %c0_i32 : i32, i32
  }
}

</mosaic_0001>

<bundles_post_ra>
// kernel: tpu_custom_call.1
= control target key start
LH: loop header
LB: loop body
LE: loop exit
PB: predicated region body
PF: predicated region fallthrough
CT: control target
= control target key end

     0   :  { %13 = vsyncpa [#allocation3], 0  ;;  %s713_s0 = inlined_call_operand.hbm [shape: f32[8,64], index: 0, kind: input, shape index: {}]   ;;  %s714_s1 = inlined_call_operand.vmem [shape: f32[64,128], index: 1, kind: input, shape index: {}]   ;;  %s715_s2 = inlined_call_operand.vmem [shape: f32[128,128], index: 2, kind: input, shape index: {}]   ;;  %s716_s3 = inlined_call_operand.hbm [shape: f32[128,128], index: 3, kind: input, shape index: {}]   ;;  %s717_s4 = inlined_call_operand.hbm [shape: f32[128,128], index: 4, kind: input, shape index: {}]   ;;  %s718_s5 = inlined_call_operand.hbm [shape: f32[128,128], index: 5, kind: input, shape index: {}]   ;;  %s719_s6 = inlined_call_operand.vmem [shape: f32[128,64], index: 6, kind: input, shape index: {}]   ;;  %s720_s7 = inlined_call_operand.hbm [shape: f32[8,128], index: 7, kind: input, shape index: {}]   ;;  %s721_s8 = inlined_call_operand.hbm [shape: f32[8,64], index: 8, kind: output, shape index: {}]  }
   0x1   :  { %14 = vsyncpa [#allocation6], 0 }
   0x2   :  { %15 = vsyncpa [#allocation9], 0  ;;  %s36_s29 = sshll.u32 %s716_s3, 4  ;;  %s37_s29 = int_to_ptr.hbm [resolvable:$true] %s36_s29 }
   0x3   :  { %16 = vsyncpa [#allocation4], 0  ;;  %s520_s30 = smov [#allocation5]   ;;  %s62_s12 = sshll.u32 %s718_s5, 4  ;;  %s63_s12 = int_to_ptr.hbm [resolvable:$true] %s62_s12 }
   0x4   :  { %s38_s9 = sshll.u32 %s520_s30, 4  ;;  %s521_s13 = smov 128   ;;  %s39_s9 = int_to_ptr.vmem [resolvable:$true] %s38_s9 }
   0x5   :  { %s522_s14 = smov 8   ;;  %s523_s15 = smov [#allocation8]  }
   0x6   :  { %44 = dma.hbm_to_vmem [thread:$0]  %s37_s29, 2048, %s39_s9, [#allocation6], %s521_s13, %s521_s13, %s522_s14  }
   0x7   :  { %s64_s16 = sshll.u32 %s523_s15, 4  ;;  %s22_s19 = sshll.u32 %s713_s0, 4  ;;  %s65_s16 = int_to_ptr.vmem [resolvable:$true] %s64_s16  ;;  %s23_s19 = int_to_ptr.hbm [resolvable:$true] %s22_s19 }
   0x8   :  { %70 = dma.hbm_to_vmem [thread:$0]  %s63_s12, 2048, %s65_s16, [#allocation9], %s521_s13, %s521_s13, %s522_s14  }
   0x9   :  { %s49_s21 = sshll.u32 %s717_s4, 4  ;;  %s524_s22 = smov [#allocation2]   ;;  %s50_s21 = int_to_ptr.hbm [resolvable:$true] %s49_s21 }
   0xa   :  { %s24_s23 = sshll.u32 %s524_s22, 4  ;;  %s525_s5 = smov [#allocation7]   ;;  %s25_s23 = int_to_ptr.vmem [resolvable:$true] %s24_s23 }
   0xb   :  { %27 = dma.hbm_to_vmem [thread:$0]  %s23_s19, 128, %s25_s23, [#allocation3]  }
   0xc   :  { %s51_s24 = sshll.u32 %s525_s5, 4  ;;  %s78_s27 = sshll.u32 %s720_s7, 4  ;;  %s52_s24 = int_to_ptr.vmem [resolvable:$true] %s51_s24  ;;  %s79_s27 = int_to_ptr.hbm [resolvable:$true] %s78_s27 }
   0xd   :  { %57 = dma.hbm_to_vmem [thread:$0]  %s50_s21, 2048, %s52_s24, [#allocation6], %s521_s13, %s521_s13, %s522_s14  }
   0xe   :  { %s526_s0 = smov [#allocation10]  }
   0xf   :  { %s80_s28 = sshll.u32 %s526_s0, 4  ;;  %s81_s28 = int_to_ptr.vmem [resolvable:$true] %s80_s28 }
  0x10   :  { %83 = dma.hbm_to_vmem [thread:$0]  %s79_s27, 128, %s81_s28, [#allocation9]  }
  0x11   :  { %512 = dma.done.wait [#allocation3], 128  }
  0x12   :  { %513 = vsyncadd [#allocation3], 4294967168 }
  0x13   :  { %514 = dma.done.wait [#allocation6], 4096  }
  0x14   :  { %515 = vsyncadd [#allocation6], 4294963200 }
  0x15   :  { %516 = dma.done.wait [#allocation9], 2176  }
  0x16   :  { %517 = vsyncadd [#allocation9], 4294965120  ;;  %v112_v0 = vld [vmem:[%s714_s1 + $0x38] sm:$0xff]  ;;  %v111_v1 = vld [vmem:[%s714_s1 + $0x30] sm:$0xff]  ;;  %vm115_vm0 = vcmask 523264   ;;  %s527_s25 = smov [#allocation11]  }
  0x17   :  { %127 = vmatpush.msra.mxu0 %v112_v0  ;;  %v110_v2 = vld [vmem:[%s714_s1 + $0x28] sm:$0xff]  ;;  %v155_v3 = vld [vmem:[%s715_s2 + $0x78] sm:$0xff]  ;;  %v154_v4 = vld [vmem:[%s715_s2 + $0x70] sm:$0xff]  ;;  %s339_s26 = sshll.u32 %s527_s25, 4  ;;  %s341_s28 = sshll.u32 %s721_s8, 4  ;;  %s340_s26 = int_to_ptr.vmem [resolvable:$true] %s339_s26  ;;  %s342_s28 = int_to_ptr.hbm [resolvable:$true] %s341_s28 }
  0x18   :  { %v109_v5 = vld [vmem:[%s714_s1 + $0x20] sm:$0xff]  ;;  %158 = vmatpush.msra.mxu1 %v155_v3  ;;  %v153_v6 = vld [vmem:[%s715_s2 + $0x68] sm:$0xff]  ;;  %v108_v7 = vld [vmem:[%s714_s1 + $0x18] sm:$0xff] }
  0x19   :  { %128 = vmatpush.msra.mxu0 %v111_v1  ;;  %v107_v8 = vld [vmem:[%s714_s1 + $0x10] sm:$0xff]  ;;  %v152_v9 = vld [vmem:[%s715_s2 + $0x60] sm:$0xff]  ;;  %v151_v10 = vld [vmem:[%s715_s2 + $0x58] sm:$0xff] }
  0x1a   :  { %159 = vmatpush.msra.mxu1 %v154_v4  ;;  %v106_v11 = vld [vmem:[%s714_s1 + $0x8] sm:$0xff]  ;;  %v150_v12 = vld [vmem:[%s715_s2 + $0x50] sm:$0xff]  ;;  %v105_v13 = vld [vmem:[%s714_s1] sm:$0xff] }
  0x1b   :  { %129 = vmatpush.msra.mxu0 %v110_v2  ;;  %v104_v14 = vld [vmem:[#allocation2] sm:$0xff]  ;;  %v149_v15 = vld [vmem:[%s715_s2 + $0x48] sm:$0xff]  ;;  %v147_v17 = vld [vmem:[%s715_s2 + $0x38] sm:$0xff] }
  0x1c   :  { %160 = vmatpush.msra.mxu1 %v153_v6  ;;  %v148_v16 = vld [vmem:[%s715_s2 + $0x40] sm:$0xff]  ;;  %v146_v18 = vld [vmem:[%s715_s2 + $0x30] sm:$0xff]  ;;  %v145_v19 = vld [vmem:[%s715_s2 + $0x28] sm:$0xff] }
  0x1d   :  { %130 = vmatpush.msra.mxu0 %v109_v5  ;;  %v144_v20 = vld [vmem:[%s715_s2 + $0x20] sm:$0xff]  ;;  %v143_v21 = vld [vmem:[%s715_s2 + $0x18] sm:$0xff]  ;;  %v142_v22 = vld [vmem:[%s715_s2 + $0x10] sm:$0xff] }
  0x1e   :  { %161 = vmatpush.msra.mxu1 %v152_v9  ;;  %v141_v23 = vld [vmem:[%s715_s2 + $0x8] sm:$0xff]  ;;  %v140_v24 = vld [vmem:[%s715_s2] sm:$0xff]  ;;  %v193_v26 = vld [vmem:[#allocation5 + $0x70] sm:$0xff] }
  0x1f   :  { %131 = vmatpush.msra.mxu0 %v108_v7  ;;  %v194_v25 = vld [vmem:[#allocation5 + $0x78] sm:$0xff]  ;;  %v192_v27 = vld [vmem:[#allocation5 + $0x68] sm:$0xff]  ;;  %v191_v28 = vld [vmem:[#allocation5 + $0x60] sm:$0xff] }
  0x20   :  { %162 = vmatpush.msra.mxu1 %v151_v10  ;;  %197 = vmatpush.msra.mxu2 %v194_v25  ;;  %v190_v29 = vld [vmem:[#allocation5 + $0x58] sm:$0xff]  ;;  %v189_v30 = vld [vmem:[#allocation5 + $0x50] sm:$0xff]  ;;  %v188_v31 = vld [vmem:[#allocation5 + $0x48] sm:$0xff] }
  0x21   :  { %132 = vmatpush.msra.mxu0 %v107_v8  ;;  %v187_v32 = vld [vmem:[#allocation5 + $0x40] sm:$0xff]  ;;  %v186_v33 = vld [vmem:[#allocation5 + $0x38] sm:$0xff]  ;;  %v185_v34 = vld [vmem:[#allocation5 + $0x30] sm:$0xff] }
  0x22   :  { %163 = vmatpush.msra.mxu1 %v150_v12  ;;  %198 = vmatpush.msra.mxu2 %v193_v26  ;;  %v184_v35 = vld [vmem:[#allocation5 + $0x28] sm:$0xff]  ;;  %v183_v36 = vld [vmem:[#allocation5 + $0x20] sm:$0xff]  ;;  %v182_v37 = vld [vmem:[#allocation5 + $0x18] sm:$0xff] }
  0x23   :  { %133 = vmatpush.msra.mxu0 %v106_v11  ;;  %v362_v38 = vld [vmem:[#allocation10] ss:$0 sm:$0xff]  ;;  %v181_v42 = vld [vmem:[#allocation5 + $0x10] sm:$0xff]  ;;  %v180_v43 = vld [vmem:[#allocation5 + $0x8] sm:$0xff] }
  0x24   :  { %164 = vmatpush.msra.mxu1 %v149_v15  ;;  %199 = vmatpush.msra.mxu2 %v192_v27  ;;  %v179_v44 = vld [vmem:[#allocation5] sm:$0xff]  ;;  %v232_v45 = vld [vmem:[#allocation7 + $0x78] sm:$0xff]  ;;  %v231_v46 = vld [vmem:[#allocation7 + $0x70] sm:$0xff] }
  0x25   :  { %134 = vmatpush.msra.mxu0 %v105_v13  ;;  %235 = vmatpush.msra.mxu3 %v232_v45  ;;  %v230_v47 = vld [vmem:[#allocation7 + $0x68] sm:$0xff]  ;;  %v229_v48 = vld [vmem:[#allocation7 + $0x60] sm:$0xff]  ;;  %v228_v49 = vld [vmem:[#allocation7 + $0x58] sm:$0xff] }
  0x26   :  { %353 = vmatmul.msk.f32.vlgmr.msra.gmra.mxu0 %vm115_vm0, %v104_v14  ;;  %165 = vmatpush.msra.mxu1 %v148_v16  ;;  %v227_v50 = vld [vmem:[#allocation7 + $0x50] sm:$0xff]  ;;  %v226_v51 = vld [vmem:[#allocation7 + $0x48] sm:$0xff]  ;;  %v225_v52 = vld [vmem:[#allocation7 + $0x40] sm:$0xff] }
  0x27   :  { %200 = vmatpush.msra.mxu2 %v191_v28  ;;  %236 = vmatpush.msra.mxu3 %v231_v46  ;;  %v224_v53 = vld [vmem:[#allocation7 + $0x38] sm:$0xff]  ;;  %v223_v54 = vld [vmem:[#allocation7 + $0x30] sm:$0xff]  ;;  %v222_v55 = vld [vmem:[#allocation7 + $0x28] sm:$0xff] }
  0x28   :  { %166 = vmatpush.msra.mxu1 %v147_v17  ;;  %v221_v56 = vld [vmem:[#allocation7 + $0x20] sm:$0xff]  ;;  %v220_v57 = vld [vmem:[#allocation7 + $0x18] sm:$0xff]  ;;  %v219_v59 = vld [vmem:[#allocation7 + $0x10] sm:$0xff] }
  0x29   :  { %201 = vmatpush.msra.mxu2 %v190_v29  ;;  %237 = vmatpush.msra.mxu3 %v230_v47  ;;  %v363_v58 = vld [vmem:[#allocation10 + $0x1] ss:$0 sm:$0xff]  ;;  %v218_v63 = vld [vmem:[#allocation7 + $0x8] sm:$0xff]  ;;  %v271_v1 = vld [vmem:[#allocation8 + $0x78] sm:$0xff] }
  0x2a   :  { %167 = vmatpush.msra.mxu1 %v146_v18  ;;  %v217_v0 = vld [vmem:[#allocation7] sm:$0xff]  ;;  %v270_v2 = vld [vmem:[#allocation8 + $0x70] sm:$0xff]  ;;  %274 = vmatpush.msrb.mxu0 %v271_v1  ;;  %v269_v3 = vld [vmem:[#allocation8 + $0x68] sm:$0xff] }
  0x2b   :  { %202 = vmatpush.msra.mxu2 %v189_v30  ;;  %238 = vmatpush.msra.mxu3 %v229_v48  ;;  %v268_v4 = vld [vmem:[#allocation8 + $0x60] sm:$0xff]  ;;  %v267_v5 = vld [vmem:[#allocation8 + $0x58] sm:$0xff]  ;;  %v266_v6 = vld [vmem:[#allocation8 + $0x50] sm:$0xff] }
  0x2c   :  { %168 = vmatpush.msra.mxu1 %v145_v19  ;;  %275 = vmatpush.msrb.mxu0 %v270_v2  ;;  %v265_v7 = vld [vmem:[#allocation8 + $0x48] sm:$0xff]  ;;  %v264_v8 = vld [vmem:[#allocation8 + $0x40] sm:$0xff]  ;;  %v263_v9 = vld [vmem:[#allocation8 + $0x38] sm:$0xff] }
  0x2d   :  { %203 = vmatpush.msra.mxu2 %v188_v31  ;;  %239 = vmatpush.msra.mxu3 %v228_v49  ;;  %v262_v10 = vld [vmem:[#allocation8 + $0x30] sm:$0xff]  ;;  %v261_v11 = vld [vmem:[#allocation8 + $0x28] sm:$0xff]  ;;  %v260_v12 = vld [vmem:[#allocation8 + $0x20] sm:$0xff] }
  0x2e   :  { %169 = vmatpush.msra.mxu1 %v144_v20  ;;  %276 = vmatpush.msrb.mxu0 %v269_v3  ;;  %v259_v13 = vld [vmem:[#allocation8 + $0x18] sm:$0xff]  ;;  %v364_v14 = vld [vmem:[#allocation10 + $0x2] ss:$0 sm:$0xff]  ;;  %v258_v17 = vld [vmem:[#allocation8 + $0x10] sm:$0xff] }
  0x2f   :  { %204 = vmatpush.msra.mxu2 %v187_v32  ;;  %240 = vmatpush.msra.mxu3 %v227_v50  ;;  %v257_v18 = vld [vmem:[#allocation8 + $0x8] sm:$0xff]  ;;  %v256_v19 = vld [vmem:[#allocation8] sm:$0xff]  ;;  %v310_v20 = vld [vmem:[%s719_s6 + $0x78] sm:$0xff] }
  0x30   :  { %170 = vmatpush.msra.mxu1 %v143_v21  ;;  %277 = vmatpush.msrb.mxu0 %v268_v4  ;;  %v309_v21 = vld [vmem:[%s719_s6 + $0x70] sm:$0xff]  ;;  %v304_v26 = vld [vmem:[%s719_s6 + $0x48] sm:$0xff]  ;;  %v303_v27 = vld [vmem:[%s719_s6 + $0x40] sm:$0xff] }
  0x31   :  { %205 = vmatpush.msra.mxu2 %v186_v33  ;;  %241 = vmatpush.msra.mxu3 %v226_v51  ;;  %v305_v25 = vld [vmem:[%s719_s6 + $0x50] sm:$0xff]  ;;  %v302_v28 = vld [vmem:[%s719_s6 + $0x38] sm:$0xff]  ;;  %v300_v30 = vld [vmem:[%s719_s6 + $0x28] sm:$0xff] }
  0x32   :  { %171 = vmatpush.msra.mxu1 %v142_v22  ;;  %278 = vmatpush.msrb.mxu0 %v267_v5  ;;  %v308_v22 = vld [vmem:[%s719_s6 + $0x68] sm:$0xff]  ;;  %v301_v29 = vld [vmem:[%s719_s6 + $0x30] sm:$0xff]  ;;  %v299_v31 = vld [vmem:[%s719_s6 + $0x20] sm:$0xff] }
  0x33   :  { %206 = vmatpush.msra.mxu2 %v185_v34  ;;  %242 = vmatpush.msra.mxu3 %v225_v52  ;;  %v298_v32 = vld [vmem:[%s719_s6 + $0x18] sm:$0xff]  ;;  %v365_v33 = vld [vmem:[#allocation10 + $0x3] ss:$0 sm:$0xff] }
  0x34   :  { %172 = vmatpush.msra.mxu1 %v141_v23  ;;  %279 = vmatpush.msrb.mxu0 %v266_v6  ;;  %v307_v23 = vld [vmem:[%s719_s6 + $0x60] sm:$0xff] }
  0x35   :  { %207 = vmatpush.msra.mxu2 %v184_v35  ;;  %243 = vmatpush.msra.mxu3 %v224_v53 }
  0x36   :  { %173 = vmatpush.msra.mxu1 %v140_v24  ;;  %280 = vmatpush.msrb.mxu0 %v265_v7  ;;  %v306_v24 = vld [vmem:[%s719_s6 + $0x58] sm:$0xff] }
  0x37   :  { %208 = vmatpush.msra.mxu2 %v183_v36  ;;  %244 = vmatpush.msra.mxu3 %v223_v54 }
  0x38   :  { %281 = vmatpush.msrb.mxu0 %v264_v8  ;;  %313 = vmatpush.msrb.mxu1 %v310_v20 }
  0x39   :  { %209 = vmatpush.msra.mxu2 %v182_v37  ;;  %245 = vmatpush.msra.mxu3 %v222_v55  ;;  %v297_v37 = vld [vmem:[%s719_s6 + $0x10] sm:$0xff] }
  0x3a   :  { %282 = vmatpush.msrb.mxu0 %v263_v9  ;;  %314 = vmatpush.msrb.mxu1 %v309_v21 }
  0x3b   :  { %210 = vmatpush.msra.mxu2 %v181_v42  ;;  %246 = vmatpush.msra.mxu3 %v221_v56 }
  0x3c   :  { %283 = vmatpush.msrb.mxu0 %v262_v10  ;;  %315 = vmatpush.msrb.mxu1 %v308_v22 }
  0x3d   :  { %211 = vmatpush.msra.mxu2 %v180_v43  ;;  %247 = vmatpush.msra.mxu3 %v220_v57 }
  0x3e   :  { %284 = vmatpush.msrb.mxu0 %v261_v11  ;;  %316 = vmatpush.msrb.mxu1 %v307_v23 }
  0x3f   :  { %212 = vmatpush.msra.mxu2 %v179_v44  ;;  %248 = vmatpush.msra.mxu3 %v219_v59  ;;  %v367_v44 = vld [vmem:[#allocation10 + $0x5] ss:$0 sm:$0xff] }
  0x40   :  { %285 = vmatpush.msrb.mxu0 %v260_v12  ;;  %317 = vmatpush.msrb.mxu1 %v306_v24 }
  0x41   :  { %249 = vmatpush.msra.mxu3 %v218_v63 }
  0x42   :  { %286 = vmatpush.msrb.mxu0 %v259_v13  ;;  %318 = vmatpush.msrb.mxu1 %v305_v25 }
  0x43   :  { %250 = vmatpush.msra.mxu3 %v217_v0 }
  0x44   :  { %287 = vmatpush.msrb.mxu0 %v258_v17  ;;  %319 = vmatpush.msrb.mxu1 %v304_v26 }
  0x46   :  { %288 = vmatpush.msrb.mxu0 %v257_v18  ;;  %320 = vmatpush.msrb.mxu1 %v303_v27 }
  0x48   :  { %289 = vmatpush.msrb.mxu0 %v256_v19  ;;  %321 = vmatpush.msrb.mxu1 %v302_v28 }
  0x4a   :  { %322 = vmatpush.msrb.mxu1 %v301_v29 }
  0x4c   :  { %323 = vmatpush.msrb.mxu1 %v300_v30 }
  0x4e   :  { %324 = vmatpush.msrb.mxu1 %v299_v31 }
  0x50   :  { %325 = vmatpush.msrb.mxu1 %v298_v32 }
  0x52   :  { %326 = vmatpush.msrb.mxu1 %v297_v37 }
  0xa3   :  { %v136_v39 = vpop.f32.mrf.mxu0 }
  0xa4   :  { %v137_v40 = vadd.f32 %v362_v38, %v136_v39  ;;  %v296_v38 = vld [vmem:[%s719_s6 + $0x8] sm:$0xff]  ;;  %v295_v39 = vld [vmem:[%s719_s6] sm:$0xff] }
  0xa5   :  { %327 = vmatpush.msrb.mxu1 %v296_v38 }
  0xa6   :  { %v139_v41 = vmax.f32 %v137_v40, 0.0  ;;  %v366_v40 = vld [vmem:[#allocation10 + $0x4] ss:$0 sm:$0xff] }
  0xa7   :  { %328 = vmatpush.msrb.mxu1 %v295_v39 }
  0xa8   :  { %174 = vmatmul.f32.vlgmr.msra.gmra.mxu1 %v139_v41 }
 0x125   :  { %v175_v60 = vpop.f32.mrf.mxu1 }
 0x126   :  { %v176_v61 = vadd.f32 %v363_v58, %v175_v60 }
 0x128   :  { %v178_v62 = vmax.f32 %v176_v61, 0.0 }
 0x12a   :  { %213 = vmatmul.f32.vlgmr.msra.gmra.mxu2 %v178_v62 }
 0x1ad   :  { %v214_v15 = vpop.f32.mrf.mxu2 }
 0x1ae   :  { %v215_v16 = vadd.f32 %v364_v14, %v214_v15 }
 0x1b0   :  { %251 = vmatmul.f32.vlgmr.msra.gmra.mxu3 %v215_v16 }
 0x233   :  { %v252_v34 = vpop.f32.mrf.mxu3 }
 0x234   :  { %v253_v35 = vadd.f32 %v365_v33, %v252_v34 }
 0x236   :  { %v255_v36 = vmax.f32 %v253_v35, 0.0 }
 0x238   :  { %290 = vmatmul.f32.vlgmr.msrb.gmra.mxu0 %v255_v36 }
 0x2b5   :  { %v291_v41 = vpop.f32.mrf.mxu0 }
 0x2b6   :  { %v292_v42 = vadd.f32 %v366_v40, %v291_v41 }
 0x2b8   :  { %v294_v43 = vmax.f32 %v292_v42, 0.0 }
 0x2ba   :  { %329 = vmatmul.f32.vlgmr.msrb.gmra.mxu1 %v294_v43 }
 0x337   :  { %v330_v45 = vpop.f32.mrf.mxu1 }
 0x338   :  { %v331_v46 = vadd.f32 %v367_v44, %v330_v45 }
 0x33a   :  { %333 = vst.msk [vmem:[#allocation11] sm:$0xff] %vm115_vm0, %v331_v46 }
 0x33b   :  { %344 = dma.vmem_to_hbm [thread:$0]  %s340_s26, 128, %s342_s28, [#allocation4]  }
 0x33c   :  { %518 = dma.done.wait [#allocation4], 128  }
 0x33d   :  { %519 = vsyncadd [#allocation4], 4294967168 }
 0x33e   :  { %349 = vsyncpa [#allocation3], 1 }
 0x33f   :  { %350 = vsyncpa [#allocation6], 1 }
 0x340   :  { %351 = vsyncpa [#allocation9], 1 }
 0x341   :  { %352 = vsyncpa [#allocation4], 1 }

</bundles_post_ra>
